<compile_context>
chip_gen: v7x
topology: tpu7x:2x2x1
jax: 0.10.0
libtpu: 0.0.40
codegen_flags: <defaults>
</compile_context>

<pallas_src>
import math

import jax
import jax.numpy as jnp
from jax.experimental import pallas as pl
from jax.experimental.pallas import tpu as pltpu


def _asp_kernel(x_ref, w1_ref, b1_ref, w2_ref, b2_ref, o_ref):
    """One grid step: a (bb, C, T) batch block in native NCT layout.

    x_ref : (bb, C, T) native dtype (bf16 or f32; no host-side cast)
    w1_ref: (A, C) matmul dtype (bf16), b1_ref: (A, 1) f32
    w2_ref: (C, A) matmul dtype (bf16), b2_ref: (C, 1) f32
    o_ref : (bb, 2, C) f32  -> row 0 = mean, row 1 = std
    """
    bb = x_ref.shape[0]
    mm_dtype = w1_ref.dtype

    # Weight / bias loads hoisted out of the batch loop.  pl.loop emits the
    # body once (not bb times), so the bias lane-broadcast inside the add is
    # emitted a single time as well.
    w1 = w1_ref[...]            # (A, C)
    w2 = w2_ref[...]            # (C, A)
    b1 = b1_ref[...]            # (A, 1) broadcast over T (lanes) in the add
    b2 = b2_ref[...]            # (C, 1)

    @pl.loop(0, bb)
    def _(i):
        x = x_ref[i]                                    # (C, T) native dtype
        x_mm = x.astype(mm_dtype)                       # no-op when x is bf16
        x_f32 = x.astype(jnp.float32)                   # no-op when x is f32

        # linear1 (Conv1d k=1): (A, C) @ (C, T) + b1 -> tanh
        h = jnp.tanh(
            jnp.dot(w1, x_mm, preferred_element_type=jnp.float32) + b1
        )                                               # (A, T) f32

        # linear2 (Conv1d k=1): (C, A) @ (A, T) + b2
        logits = (
            jnp.dot(w2, h.astype(mm_dtype), preferred_element_type=jnp.float32)
            + b2
        )                                               # (C, T) f32

        # Unnormalized, max-stabilized softmax over time (lane axis).  The
        # normalization is folded into the statistics: dividing the reduced
        # sums by d is exact, removes a full (C, T) VPU multiply + the lane
        # broadcast of 1/denom, and drops the approx-reciprocal bias.
        m = jnp.max(logits, axis=1, keepdims=True)      # (C, 1)
        e = jnp.exp(logits - m)                         # (C, T)
        d = jnp.sum(e, axis=1)                          # (C,)

        wx = e * x_f32                                  # (C, T), reused below
        s1 = jnp.sum(wx, axis=1)                        # (C,) = d * mean
        s2 = jnp.sum(wx * x_f32, axis=1)                # (C,) = d * E[x^2]

        inv_d = 1.0 / d                                 # exact divide, C elems
        mean = s1 * inv_d
        ex2 = s2 * inv_d
        var = ex2 - mean * mean
        std = jnp.sqrt(jnp.maximum(var, 1e-9))

        # epilogue: two plain row stores (no concat / XLU shuffle)
        o_ref[pl.ds(i, 1), 0:1, :] = mean[None, None, :]
        o_ref[pl.ds(i, 1), 1:2, :] = std[None, None, :]


def _vmem_capacity_bytes():
    """Per-core VMEM capacity; conservative fallback if the query is unavailable."""
    try:
        info = pltpu.get_tpu_info()
        cap = getattr(info, "vmem_capacity_bytes", None)
        if cap:
            return int(cap)
    except Exception:
        pass
    return 64 << 20  # v7x per-TensorCore VMEM (smallest current gen)


def _needed_vmem_bytes(bb, C, T, A, x_itemsize, mm_itemsize):
    x_block = bb * C * T * x_itemsize            # double-buffered input block
    out_block = bb * 2 * C * 4                   # double-buffered output block
    # Per-iteration 2D intermediates: h (A,T), logits/e (C,T), wx (C,T),
    # f32 upcast of x (C,T) + slack; single-buffered (live inside the loop).
    interm = (A * T + 4 * C * T) * 4
    weights = (2 * A * C) * mm_itemsize + (A + C) * 4
    return 2 * (x_block + out_block) + interm + 2 * weights + (2 << 20)


def _pick_block_b(B, max_bb, budget, C, T, A, x_itemsize, mm_itemsize):
    """Largest bb dividing B with >= min(4, B) grid steps and a VMEM-fitting block."""
    min_steps = min(4, B)
    best = 1
    for bb in range(1, max(1, min(max_bb, B)) + 1):
        if B % bb:
            continue
        if B // bb < min_steps:
            continue
        if _needed_vmem_bytes(bb, C, T, A, x_itemsize, mm_itemsize) > budget:
            continue
        best = bb
    return best


def attentive_stats_pool(x_nct, w1, b1, w2, b2, *, block_b=8,
                         matmul_dtype=jnp.bfloat16):
    """x_nct: (B, C, T), same layout (and dtype) as the PyTorch module input.

    w1: (A, C) conv1d weight (kernel dim squeezed), b1: (A,)
    w2: (C, A) conv1d weight,                       b2: (C,)
    Returns (B, 2*C) = cat([mean, std], dim=1), f32.
    """
    B, C, T = x_nct.shape
    A = w1.shape[0]

    x_itemsize = jnp.dtype(x_nct.dtype).itemsize
    mm_itemsize = jnp.dtype(matmul_dtype).itemsize

    vmem_cap = _vmem_capacity_bytes()
    budget = int(0.8 * vmem_cap)                 # keep ~20% headroom

    bb = _pick_block_b(B, block_b, budget, C, T, A, x_itemsize, mm_itemsize)
    nb = B // bb                                 # bb divides B exactly

    needed = _needed_vmem_bytes(bb, C, T, A, x_itemsize, mm_itemsize)
    vmem_limit = int(min(max(needed, 32 << 20), int(0.9 * vmem_cap)))

    # Weights cast once on the host (tiny); matmuls accumulate in f32 in-kernel.
    w1m = w1.astype(matmul_dtype)                # (A, C)
    w2m = w2.astype(matmul_dtype)                # (C, A)
    b1r = b1.reshape(A, 1).astype(jnp.float32)
    b2r = b2.reshape(C, 1).astype(jnp.float32)

    out = pl.pallas_call(
        _asp_kernel,
        out_shape=jax.ShapeDtypeStruct((B, 2, C), jnp.float32),
        grid_spec=pltpu.PrefetchScalarGridSpec(
            num_scalar_prefetch=0,
            grid=(nb,),
            in_specs=[
                pl.BlockSpec((bb, C, T), lambda g: (g, 0, 0)),   # x, native NCT/dtype
                pl.BlockSpec((A, C), lambda g: (0, 0)),          # W1
                pl.BlockSpec((A, 1), lambda g: (0, 0)),          # b1
                pl.BlockSpec((C, A), lambda g: (0, 0)),          # W2
                pl.BlockSpec((C, 1), lambda g: (0, 0)),          # b2
            ],
            out_specs=pl.BlockSpec((bb, 2, C), lambda g: (g, 0, 0)),
        ),
        compiler_params=pltpu.CompilerParams(
            dimension_semantics=("parallel",),
            vmem_limit_bytes=vmem_limit,
        ),
    )(x_nct, w1m, b1r, w2m, b2r)

    return out.reshape(B, 2 * C)


def _reference(x_nct, w1, b1, w2, b2):
    # Pure-JAX f32 reference mirroring the PyTorch forward (global_context_att=False).
    x = x_nct.astype(jnp.float32)                                 # (B, C, T)
    a = jnp.tanh(jnp.einsum("ac,bct->bat", w1, x) + b1[None, :, None])
    logits = jnp.einsum("ca,bat->bct", w2, a) + b2[None, :, None]
    alpha = jax.nn.softmax(logits, axis=2)
    mean = jnp.sum(alpha * x, axis=2)
    resid = jnp.sum(alpha * x * x, axis=2) - mean ** 2
    std = jnp.sqrt(jnp.clip(resid, 1e-9, None))
    return jnp.concatenate([mean, std], axis=1)


if __name__ == "__main__":
    # Small shapes consistent with the module: batch=8, in_dim(C)=16, T=16,
    # attention_channels(A)=32.  B=8 exercises the batch-blocked loop path
    # (bb=2, 4 grid steps).
    B, C, T, A = 8, 16, 16, 32

    key = jax.random.PRNGKey(0)
    kx, kw1, kb1, kw2, kb2 = jax.random.split(key, 5)

    x = jax.random.normal(kx, (B, C, T), dtype=jnp.float32)

    # Deterministic parameter init (Conv1d kernel_size=1 weights, kernel dim squeezed).
    w1 = jax.random.normal(kw1, (A, C), dtype=jnp.float32) * (1.0 / math.sqrt(C))
    b1 = jax.random.normal(kb1, (A,), dtype=jnp.float32) * 0.01
    w2 = jax.random.normal(kw2, (C, A), dtype=jnp.float32) * (1.0 / math.sqrt(A))
    b2 = jax.random.normal(kb2, (C,), dtype=jnp.float32) * 0.01

    # --- f32 input path (matches the PyTorch module's default dtype) ---
    out = jax.block_until_ready(attentive_stats_pool(x, w1, b1, w2, b2))
    ref = _reference(x, w1, b1, w2, b2)
    assert out.shape == (B, 2 * C), out.shape
    max_err = float(jnp.max(jnp.abs(out - ref)))
    # Tolerance loosened vs. pure-f32 because the two matmuls use bf16 operands
    # (f32 accumulation); observed error is ~1e-3 at these shapes.
    assert jnp.allclose(out, ref, atol=3e-2, rtol=3e-2), max_err

    # --- bf16 input path (no host-side cast; kernel consumes bf16 directly) ---
    x_bf16 = x.astype(jnp.bfloat16)
    out_bf16 = jax.block_until_ready(attentive_stats_pool(x_bf16, w1, b1, w2, b2))
    ref_bf16 = _reference(x_bf16.astype(jnp.float32), w1, b1, w2, b2)
    max_err_bf16 = float(jnp.max(jnp.abs(out_bf16 - ref_bf16)))
    assert jnp.allclose(out_bf16, ref_bf16, atol=5e-2, rtol=5e-2), max_err_bf16

    print("KERNEL_OK")
</pallas_src>

<mosaic_0001>
module attributes {stable_mosaic.version = 11 : i64} {
  func.func @_asp_kernel(%arg0: i32, %arg1: memref<2x16x16xf32, #tpu.memory_space<vmem>>, %arg2: memref<32x16xbf16, #tpu.memory_space<vmem>>, %arg3: memref<32x1xf32, #tpu.memory_space<vmem>>, %arg4: memref<16x32xbf16, #tpu.memory_space<vmem>>, %arg5: memref<16x1xf32, #tpu.memory_space<vmem>>, %arg6: memref<2x2x16xf32, #tpu.memory_space<vmem>>) attributes {dimension_semantics = [#tpu.dimension_semantics<parallel>], iteration_bounds = array<i64: 4>, scalar_prefetch = 0 : i64, scratch_operands = 0 : i64, tpu.core_type = #tpu.core_type<tc>, window_params = [{transform_indices = @transform_0, window_bounds = array<i64: 2, 16, 16>}, {pipeline_mode = #tpu.pipeline_mode<synchronous>, transform_indices = @transform_1, window_bounds = array<i64: 32, 16>}, {pipeline_mode = #tpu.pipeline_mode<synchronous>, transform_indices = @transform_2, window_bounds = array<i64: 32, 1>}, {pipeline_mode = #tpu.pipeline_mode<synchronous>, transform_indices = @transform_3, window_bounds = array<i64: 16, 32>}, {pipeline_mode = #tpu.pipeline_mode<synchronous>, transform_indices = @transform_4, window_bounds = array<i64: 16, 1>}, {transform_indices = @transform_5, window_bounds = array<i64: 2, 2, 16>}]} {
    %c0 = arith.constant 0 : index
    %c0_0 = arith.constant 0 : index
    %0 = vector.load %arg2[%c0, %c0_0] : memref<32x16xbf16, #tpu.memory_space<vmem>>, vector<32x16xbf16>
    %c0_1 = arith.constant 0 : index
    %c0_2 = arith.constant 0 : index
    %1 = vector.load %arg4[%c0_1, %c0_2] : memref<16x32xbf16, #tpu.memory_space<vmem>>, vector<16x32xbf16>
    %c0_3 = arith.constant 0 : index
    %c0_4 = arith.constant 0 : index
    %2 = vector.load %arg3[%c0_3, %c0_4] : memref<32x1xf32, #tpu.memory_space<vmem>>, vector<32x1xf32>
    %c0_5 = arith.constant 0 : index
    %c0_6 = arith.constant 0 : index
    %3 = vector.load %arg5[%c0_5, %c0_6] : memref<16x1xf32, #tpu.memory_space<vmem>>, vector<16x1xf32>
    %c0_i32 = arith.constant 0 : i32
    %c2_i32 = arith.constant 2 : i32
    %4 = arith.addi %c0_i32, %c2_i32 : i32
    %c1_i32 = arith.constant 1 : i32
    scf.for %arg7 = %c0_i32 to %4 step %c1_i32  : i32 {
      %c1_i32_8 = arith.constant 1 : i32
      %5 = arith.muli %arg7, %c1_i32_8 : i32
      %c0_i32_9 = arith.constant 0 : i32
      %6 = arith.addi %c0_i32_9, %5 : i32
      %7 = arith.index_cast %6 : i32 to index
      %c0_10 = arith.constant 0 : index
      %c0_11 = arith.constant 0 : index
      %8 = vector.load %arg1[%7, %c0_10, %c0_11] : memref<2x16x16xf32, #tpu.memory_space<vmem>>, vector<1x16x16xf32>
      %9 = vector.shape_cast %8 : vector<1x16x16xf32> to vector<16x16xf32>
      %10 = arith.truncf %9 : vector<16x16xf32> to vector<16x16xbf16>
      %cst = arith.constant dense<0.000000e+00> : vector<32x16xf32>
      %11 = tpu.matmul %0, %10, %cst {dimension_numbers = #tpu.dot_dimension_numbers<[1], [0], [0], [1], [0, 0, 1, 1], [], []>} : vector<32x16xbf16>, vector<16x16xbf16>, vector<32x16xf32> -> vector<32x16xf32>
      %12 = vector.broadcast %2 : vector<32x1xf32> to vector<32x16xf32>
      %13 = arith.addf %11, %12 : vector<32x16xf32>
      %14 = math.tanh %13 : vector<32x16xf32>
      %15 = arith.truncf %14 : vector<32x16xf32> to vector<32x16xbf16>
      %cst_12 = arith.constant dense<0.000000e+00> : vector<16x16xf32>
      %16 = tpu.matmul %1, %15, %cst_12 {dimension_numbers = #tpu.dot_dimension_numbers<[1], [0], [0], [1], [0, 0, 1, 1], [], []>} : vector<16x32xbf16>, vector<32x16xbf16>, vector<16x16xf32> -> vector<16x16xf32>
      %17 = vector.broadcast %3 : vector<16x1xf32> to vector<16x16xf32>
      %18 = arith.addf %16, %17 : vector<16x16xf32>
      %cst_13 = arith.constant dense<0xFF800000> : vector<16xf32>
      %19 = vector.multi_reduction <maximumf>, %18, %cst_13 [1] : vector<16x16xf32> to vector<16xf32>
      %20 = vector.shape_cast %19 : vector<16xf32> to vector<16x1xf32>
      %21 = vector.broadcast %20 : vector<16x1xf32> to vector<16x16xf32>
      %22 = arith.subf %18, %21 : vector<16x16xf32>
      %23 = math.exp %22 : vector<16x16xf32>
      %cst_14 = arith.constant dense<0.000000e+00> : vector<16xf32>
      %24 = vector.multi_reduction <add>, %23, %cst_14 [1] : vector<16x16xf32> to vector<16xf32>
      %25 = arith.mulf %23, %9 : vector<16x16xf32>
      %cst_15 = arith.constant dense<0.000000e+00> : vector<16xf32>
      %26 = vector.multi_reduction <add>, %25, %cst_15 [1] : vector<16x16xf32> to vector<16xf32>
      %27 = arith.mulf %25, %9 : vector<16x16xf32>
      %cst_16 = arith.constant dense<0.000000e+00> : vector<16xf32>
      %28 = vector.multi_reduction <add>, %27, %cst_16 [1] : vector<16x16xf32> to vector<16xf32>
      %cst_17 = arith.constant 1.000000e+00 : f32
      %29 = vector.broadcast %cst_17 : f32 to vector<16xf32>
      %30 = arith.divf %29, %24 : vector<16xf32>
      %31 = arith.mulf %26, %30 : vector<16xf32>
      %32 = arith.mulf %28, %30 : vector<16xf32>
      %33 = arith.mulf %31, %31 : vector<16xf32>
      %34 = arith.subf %32, %33 : vector<16xf32>
      %cst_18 = arith.constant 9.99999971E-10 : f32
      %35 = vector.broadcast %cst_18 : f32 to vector<16xf32>
      %36 = arith.maximumf %34, %35 : vector<16xf32>
      %37 = math.sqrt %36 : vector<16xf32>
      %38 = vector.shape_cast %31 : vector<16xf32> to vector<1x1x16xf32>
      %39 = arith.index_cast %6 : i32 to index
      %c0_19 = arith.constant 0 : index
      %c0_20 = arith.constant 0 : index
      %40 = vector.load %arg6[%39, %c0_19, %c0_20] : memref<2x2x16xf32, #tpu.memory_space<vmem>>, vector<1x1x16xf32>
      tpu.vector_store %arg6[%39, %c0_19, %c0_20], %38 {strides = array<i32>} : memref<2x2x16xf32, #tpu.memory_space<vmem>>, vector<1x1x16xf32>,
      %41 = vector.shape_cast %37 : vector<16xf32> to vector<1x1x16xf32>
      %42 = arith.index_cast %6 : i32 to index
      %c1 = arith.constant 1 : index
      %c0_21 = arith.constant 0 : index
      %43 = vector.load %arg6[%42, %c1, %c0_21] : memref<2x2x16xf32, #tpu.memory_space<vmem>>, vector<1x1x16xf32>
      tpu.vector_store %arg6[%42, %c1, %c0_21], %41 {strides = array<i32>} : memref<2x2x16xf32, #tpu.memory_space<vmem>>, vector<1x1x16xf32>,
    }
    %c2_i32_7 = arith.constant 2 : i32
    return
  }
  func.func @transform_0(%arg0: i32) -> (i32, i32, i32) {
    %c0_i32 = arith.constant 0 : i32
    %c0_i32_0 = arith.constant 0 : i32
    %c0_i32_1 = arith.constant 0 : i32
    return %arg0, %c0_i32, %c0_i32_0 : i32, i32, i32
  }
  func.func @transform_1(%arg0: i32) -> (i32, i32) {
    %c0_i32 = arith.constant 0 : i32
    %c0_i32_0 = arith.constant 0 : i32
    %c0_i32_1 = arith.constant 0 : i32
    return %c0_i32, %c0_i32_0 : i32, i32
  }
  func.func @transform_2(%arg0: i32) -> (i32, i32) {
    %c0_i32 = arith.constant 0 : i32
    %c0_i32_0 = arith.constant 0 : i32
    %c0_i32_1 = arith.constant 0 : i32
    return %c0_i32, %c0_i32_0 : i32, i32
  }
  func.func @transform_3(%arg0: i32) -> (i32, i32) {
    %c0_i32 = arith.constant 0 : i32
    %c0_i32_0 = arith.constant 0 : i32
    %c0_i32_1 = arith.constant 0 : i32
    return %c0_i32, %c0_i32_0 : i32, i32
  }
  func.func @transform_4(%arg0: i32) -> (i32, i32) {
    %c0_i32 = arith.constant 0 : i32
    %c0_i32_0 = arith.constant 0 : i32
    %c0_i32_1 = arith.constant 0 : i32
    return %c0_i32, %c0_i32_0 : i32, i32
  }
  func.func @transform_5(%arg0: i32) -> (i32, i32, i32) {
    %c0_i32 = arith.constant 0 : i32
    %c0_i32_0 = arith.constant 0 : i32
    %c0_i32_1 = arith.constant 0 : i32
    return %arg0, %c0_i32, %c0_i32_0 : i32, i32, i32
  }
}

</mosaic_0001>

<bundles_post_ra>
// kernel: tpu_custom_call.1
= control target key start
LH: loop header
LB: loop body
LE: loop exit
PB: predicated region body
PF: predicated region fallthrough
CT: control target
= control target key end

     0   :  { %10 = vsyncpa [#allocation3], 0  ;;  %s1161_s0 = inlined_call_operand.hbm [shape: f32[8,16,16], index: 0, kind: input, shape index: {}]   ;;  %s1162_s1 = inlined_call_operand.vmem [shape: bf16[32,16], index: 1, kind: input, shape index: {}]   ;;  %s1163_s2 = inlined_call_operand.vmem [shape: f32[32,1], index: 2, kind: input, shape index: {}]   ;;  %s1164_s3 = inlined_call_operand.vmem [shape: bf16[16,32], index: 3, kind: input, shape index: {}]   ;;  %s1165_s4 = inlined_call_operand.vmem [shape: f32[16,1], index: 4, kind: input, shape index: {}]   ;;  %s1166_s5 = inlined_call_operand.hbm [shape: f32[8,2,16], index: 5, kind: output, shape index: {}]  }
   0x1   :  { %12 = vsyncpa [#allocation3 + $0x1], 0 }
   0x2   :  { %13 = vsyncpa [#allocation4], 0 }
   0x3   :  { %15 = vsyncpa [#allocation4 + $0x1], 0  ;;  %s887_s18 = smov 0   ;;  %s889_s19 = smov 0  }
   0x4   :  { %s891_s20 = smov 0   ;;  %s893_s21 = smov 0  }
   0x5 LB: > { %s908_s22 = sadd.s32 4294967295, %s842_s21   ;;  %s613_s23 = sadd.s32 4294967294, %s842_s21   ;;  %s842_s21 = sphi %s893_s21, %s1178_s21   ;;  %s838_s20 = sphi %s891_s20, %s1177_s20   ;;  %s834_s19 = sphi %s889_s19, %s1176_s19   ;;  %s830_s18 = sphi %s887_s18, %s1175_s18  }
   0x6   : > { %s912_s24 = sadd.s32 1, %s842_s21   ;;  %s28_s25 = sadd.s32 1, %s838_s20 }
   0x7   : > { %s25_s26 = ssub.s32 %s842_s21, %s912_s24  ;;  %p35_p0 = scmp.ne.s32.totalorder %s838_s20, %s834_s19 }
   0x8   : > { %p26_p1 = scmp.eq.s32.totalorder %s25_s26, 0  ;;  %p36_p2 = scmp.eq.s32.totalorder %s842_s21, 0 }
   0x9   : > { %p41_p3 = scmp.ne.s32.totalorder %s834_s19, %s830_s18  ;;  %p42_p4 = scmp.eq.s32.totalorder %s908_s22, 0 }
   0xa   : > { %s924_s27 = scalar_select %p26_p1, %s838_s20, %s28_s25  }
   0xb   : > { %p926_p5 = por %p36_p2, %p35_p0  ;;  %p930_p6 = por %p42_p4, %p41_p3 }
   0xc   : > { %p149_p7 = scmp.eq.s32.totalorder %s908_s22, 3  ;;  %p155_p8 = scmp.eq.s32.totalorder %s613_s23, 3 }
   0xd   : > { %p671_p9 = scmp.lt.s32.totalorder %s842_s21, 4  ;;  %s187_s7 = sand.u32 1, %s838_s20  }
   0xe   : > { %p936_p10 = por %p149_p7, %p35_p0  ;;  %p940_p11 = por %p155_p8, %p41_p3 }
   0xf   : > { %s637_s8 = sshll.u32 %s842_s21, 9  ;;  %s616_s9 = sshll.u32 %s187_s7, 5 }
  0x10   : > { %s1170_s30 = scalar_select %p936_p10, 1, 0 }
  0x11   : > { %s1171_s6 = scalar_select %p940_p11, 1, 0 }
  0x12   : > { %s949_s12 = scalar_lea.hbm %s1161_s0, %s637_s8  ;;  %s191_s13 = scalar_lea.vmem [#allocation2], %s616_s9 }
  0x13   : > { %s199_s14 = sshll.u32 %s191_s13, 4  ;;  %p953_p12 = pnand %p671_p9, %p926_p5  ;;  %s957_s14 = int_to_ptr.vmem [resolvable:$true] %s199_s14 }
  0x14   : > { %s959_s16 = scalar_lea.sflag [#allocation3], %s187_s7  ;;  %s742_s17 = scalar_lea.hbm %s949_s12, 512 }
  0x15   : > { %p743_p13 = scmp.ne.s32.totalorder %s949_s12, %s742_s17  ;;  %p744_p0 = pneg %p953_p12 }
  0x16   : > { %s747_s26 = scalar_lea.hbm %s1161_s0, 2048  ;;  %p748_p3 = scmp.lt.u32.totalorder %s949_s12, %s1161_s0 }
  0x17   : > { %p745_p1 = pnand %p744_p0, %p743_p13  ;;  %p749_p4 = scmp.lt.u32.totalorder %s747_s26, %s742_s17 }
  0x18   : > { %p751_p7 = scmp.lt.u32.totalorder %s742_s17, %s949_s12 }
  0x19   : > { %p746_p2 = pneg %p745_p1  ;;  %p750_p5 = por %p749_p4, %p748_p3 }
  0x1b   : > { %p752_p8 = por %p751_p7, %p750_p5 }
  0x1d   : > { %p753_p9 = pnand %p752_p8, %p746_p2 }
  0x1f   : > { %756 = shalt.err (!%p753_p9)
}
  0x20   : > { %s757_s7 = scalar_lea.vmem %s957_s14, 512  ;;  %s848_s9 = smov [#allocation2]  }
  0x21   : > { %p758_p13 = scmp.ne.s32.totalorder %s957_s14, %s757_s7  ;;  %s762_s10 = sshll.u32 %s848_s9, 4  ;;  %s763_s10 = int_to_ptr.vmem [resolvable:$false] %s762_s10 }
  0x22   : > { %s764_s11 = scalar_lea.vmem %s763_s10, 1024  ;;  %p765_p10 = scmp.lt.s32.totalorder %s957_s14, %s763_s10 }
  0x23   : > { %p760_p1 = pnand %p758_p13, %p744_p0  ;;  %p766_p3 = scmp.lt.s32.totalorder %s764_s11, %s757_s7 }
  0x25   : > { %p761_p11 = pneg %p760_p1  ;;  %p767_p4 = por %p766_p3, %p765_p10 }
  0x27   : > { %p768_p5 = pnand %p767_p4, %p761_p11 }
  0x29   : > { %771 = shalt.err (!%p768_p5)
}
  0x2a   : > { %s849_s13 = smov 128   ;;  %s850_s17 = smov 8  }
  0x2b   : > { %666 = dma.hbm_to_vmem [thread:$0]  (!%p953_p12), %s949_s12, 512, %s957_s14, %s959_s16, %s849_s13, %s849_s13, %s850_s17  }
  0x2c   : > { %p620_p0 = scmp.ge.s32.totalorder %s842_s21, 1  ;;  %p207_p2 = scmp.lt.s32.totalorder %s842_s21, 5 }
  0x2e   : > { %p208_p7 = pnand %p620_p0, %p207_p2 }
  0x2f   : > { %s990_s23 = sand.u32 (!%p208_p7), 1, %s834_s19  }
  0x30   : > { %211 = sbr.rel (%p208_p7) target bundleno = 878 (0x36e), region = 40  ;;  %s621_s25 = sshll.u32 (!%p208_p7), %s990_s23, 5 }
  0x31   : > { %s214_s26 = scalar_lea.sflag (!%p208_p7), [#allocation3], %s990_s23  ;;  %s994_s28 = scalar_lea.vmem (!%p208_p7), [#allocation2], %s621_s25 }
  0x37   : > { %821 = dma.done.wait (%p930_p6), %s214_s26, 512  }
  0x38   : > { %823 = vsyncadd (%p930_p6), %s214_s26, 4294966784  ;;  %s622_s12 = sshll.u32 %s990_s23, 2  ;;  %v1004_v0 = vld [vmem:[%s1162_s1] sm:$0xf]  ;;  %v1009_v1 = vld [vmem:[%s1162_s1 + $0x4] sm:$0xf] }
  0x39   : > { %v1014_v2 = vld [vmem:[%s1162_s1 + $0x8] sm:$0xf]  ;;  %v1019_v3 = vld [vmem:[%s1162_s1 + $0xc] sm:$0xf]  ;;  %v1024_v4 = vld [vmem:[%s1164_s3] sm:$0xf] }
  0x3a   : > { %v1029_v5 = vld [vmem:[%s1164_s3 + $0x4] sm:$0xf]  ;;  %v1039_v7 = vld [vmem:[%s1163_s2 + $0x8] sm:$0xff]  ;;  %v1044_v8 = vld [vmem:[%s1163_s2 + $0x10] sm:$0xff]  ;;  %s1061_s25 = scalar_lea.vmem [#allocation5], %s622_s12  ;;  %s1063_s26 = smov 0  }
  0x3b   : > { %v1034_v6 = vld [vmem:[%s1163_s2] sm:$0xff]  ;;  %v1049_v9 = vld [vmem:[%s1163_s2 + $0x18] sm:$0xff]  ;;  %v1059_v11 = vld [vmem:[%s1165_s4 + $0x8] sm:$0xff] }
  0x3c   : > { %v1054_v10 = vld [vmem:[%s1165_s4] sm:$0xff] }
  0x3d LB: >> { %v624_v12 = vcombine.low %v1004_v0, %v1009_v1  ;;  %vm300_vm0 = vcmask 130048   ;;  %v851_v13 = vmov 0   ;;  %s623_s14 = sshll.u32 %s846_s26, 4  ;;  %v625_v17 = vcombine.low %v1014_v2, %v1019_v3  ;;  %s630_s15 = sshll.u32 %s846_s26, 1  ;;  %s846_s26 = sphi %s1063_s26, %s264_s26  }
  0x3e   : >> { %720 = vset.pattern.permute.xlu0 %v851_v13  ;;  %721 = vset.pattern.permute.xlu1 %v851_v13  ;;  %s266_s12 = scalar_lea.vmem %s994_s28, %s623_s14 [#allocation2]  ;;  %v852_v18 = vmov 0.0   ;;  %vm853_vm1 = vmmov 0   ;;  %v628_v37 = vcombine.low %v1024_v4, %v1029_v5  ;;  %vm377_vm2 = vcmask 261120   ;;  %s501_s16 = scalar_lea.vmem %s1061_s25, %s630_s15 [#allocation5] }
  0x3f   : >> { %647 = vmatprep.mubr.msk.bf16.mxu0 %vm300_vm0, %v624_v12  ;;  %272 = vperm.xlu0 %720, %v1034_v6   ;;  %v1075_v14 = vld [vmem:[%s266_s12] sm:$0xff]  ;;  %v1077_v15 = vld [vmem:[%s266_s12 + $0x8] sm:$0xff]  ;;  %vm497_vm3 = vcmask 130112   ;;  %vm502_vm4 = vcmask 122880   ;;  %s264_s26 = sadd.s32 1, %s846_s26  }
  0x40   : >> { %282 = vperm.xlu1 %721, %v1044_v8   ;;  %v269_v16 = vpack.c.bf16 %v1077_v15, %v1075_v14  ;;  %651 = vmatprep.subr.bf16.mxu1 %v852_v18  ;;  %p261_p6 = scmp.ge.s32.totalorder %s264_s26, 2  }
  0x41   : >> { %655 = vmatprep.mubr.msk.bf16.mxu1 %vm853_vm1, %v852_v18  ;;  %s638_s8 = sshll.u32 (%p261_p6), %s908_s22, 6  ;;  %s531_s29 = sshll.u32 (%p261_p6), %s1061_s25, 4  ;;  %s1118_s29 = int_to_ptr.vmem [resolvable:$true] %s531_s29 }
  0x42   : >> { %645 = vmatprep.subr.bf16.mxu0 %v269_v16  ;;  %s1115_s10 = scalar_lea.hbm (%p261_p6), %s1166_s5, %s638_s8  ;;  %s518_s11 = scalar_lea.sflag (%p261_p6), [#allocation4], %s990_s23 }
  0x43   : >> { %277 = vperm.xlu0 %720, %v1039_v7   ;;  %646 = vmatpush3.bf16.msra.mxu0 %v269_v16  ;;  %s772_s13 = scalar_lea.vmem (%p261_p6), %s1118_s29, 64  ;;  %p1173_p11 = scmp.ne.s32.totalorder (%p261_p6), %s1170_s30, 0 }
  0x44   : >> { %287 = vperm.xlu1 %721, %v1049_v9   ;;  %p773_p10 = scmp.ne.s32.totalorder (%p261_p6), %s1118_s29, %s772_s13  ;;  %s854_s28 = smov (%p261_p6), [#allocation5]  }
  0x45   : > { %s776_s17 = sshll.u32 (%p261_p6), %s854_s28, 4  ;;  %s777_s17 = int_to_ptr.vmem [resolvable:$false] %s776_s17 }
  0x46   : >> { %648 = vmatmul.mubr.msk.bf16.vlgmr.msra.gmra.mrb[0].mxu0 %vm300_vm0, %v625_v17  ;;  %p774_p12 = pnand (%p261_p6), %p773_p10, %p1173_p11  ;;  %s778_s22 = scalar_lea.vmem (%p261_p6), %s777_s17, 128 }
  0x47   : >> { %364 = vperm.xlu0 %720, %v1054_v10   ;;  %p779_p9 = scmp.lt.s32.totalorder (%p261_p6), %s1118_s29, %s777_s17  ;;  %p780_p13 = scmp.lt.s32.totalorder (%p261_p6), %s778_s22, %s772_s13 }
  0x48   : >> { %369 = vperm.xlu1 %721, %v1059_v11   ;;  %p775_p8 = pneg (%p261_p6), %p774_p12 }
  0x49   : > { %p781_p1 = por (%p261_p6), %p780_p13, %p779_p9 }
  0x4b   : > { %p782_p3 = pnand (%p261_p6), %p781_p1, %p775_p8 }
  0xbe   : >> { %v273_v20 = vpop.permute.xlu0 %272 }
  0xbf   : >> { %v283_v19 = vpop.permute.xlu1 %282 }
  0xc2   : >> { %v278_v27 = vpop.permute.xlu0 %277 }
  0xc3   : >> { %v288_v24 = vpop.permute.xlu1 %287 }
  0xc6   : >> { %v365_v38 = vpop.permute.xlu0 %364 }
  0xc7   : >> { %v370_v42 = vpop.permute.xlu1 %369 }
 0x119   : >> { %v649_v21 = vpop.f32.mrb[0].mxu0 }
 0x11a   : >> { %v350_v22 = vadd.f32 %v649_v21, %v283_v19  ;;  %v341_v23 = vpop.f32.mrb[1].mxu0 }
 0x11b   : >> { %v342_v25 = vadd.f32 %v341_v23, %v273_v20  ;;  %v650_v26 = vpop.f32.mrb[2].mxu0 }
 0x11c   : >> { %722 = vtanh.f32 %v350_v22  ;;  %v353_v28 = vadd.f32 %v650_v26, %v288_v24  ;;  %v344_v29 = vpop.f32.mrb[3].mxu0 }
 0x11d   : >> { %724 = vtanh.f32 %v342_v25  ;;  %v345_v30 = vadd.f32 %v344_v29, %v278_v27 }
 0x11e   : >> { %726 = vtanh.f32 %v353_v28 }
 0x11f   : >> { %728 = vtanh.f32 %v345_v30 }
 0x126   : >> { %v723_v31 = vpop.eup %722 }
 0x127   : >> { %v725_v32 = vpop.eup %724 }
 0x128   : >> { %v727_v33 = vpop.eup %726 }
 0x129   : >> { %v729_v34 = vpop.eup %728  ;;  %v361_v35 = vpack.c.bf16 %v727_v33, %v723_v31 }
 0x12a   : >> { %v360_v36 = vpack.c.bf16 %v729_v34, %v725_v32 }
 0x12c   : >> { %652 = vmatpush3.bf16.msra.mxu1 %v360_v36 }
 0x12d   : >> { %653 = vmatprep.subr.bf16.mxu1 %v852_v18 }
 0x130   : >> { %654 = vmatpush3.bf16.msra.mxu1 %v361_v35 }
 0x133   : >> { %656 = vmatmul.mubr.msk.bf16.vlgmr.msra.gmra.mrb[0].mxu1 %vm377_vm2, %v628_v37 }
 0x206   : >> { %v415_v39 = vpop.f32.mrb[0].mxu1 }
 0x207   : >> { %v416_v40 = vadd.f32 %v415_v39, %v365_v38  ;;  %v657_v41 = vpop.f32.mrb[1].mxu1 }
 0x208   : >> { %v418_v43 = vpop.f32.mrb[2].mxu1 }
 0x209   : >> { %v419_v44 = vadd.f32 %v418_v43, %v370_v42  ;;  %v658_v45 = vpop.f32.mrb[3].mxu1  ;;  %v422_v46 = vsel %vm300_vm0, %v416_v40, -inf }
 0x20a   : >> { %423 = vmax.xlane.f32.xlu0 %v422_v46 }
 0x20b   : >> { %v425_v47 = vsel %vm300_vm0, %v419_v44, -inf }
 0x20c   : >> { %426 = vmax.xlane.f32.xlu1 %v425_v47 }
 0x297   : >> { %v424_v48 = vpop.xlane.xlu0 %423 }
 0x298   : >> { %v428_v49 = vsub.f32 %v416_v40, %v424_v48 }
 0x299   : >> { %v427_v50 = vpop.xlane.xlu1 %426 }
 0x29a   : >> { %v430_v51 = vmul.f32 1.442695, %v428_v49  ;;  %v429_v52 = vsub.f32 %v419_v44, %v427_v50 }
 0x29c   : >> { %730 = vpow2.f32 %v430_v51  ;;  %v432_v53 = vmul.f32 1.442695, %v429_v52 }
 0x29e   : >> { %732 = vpow2.f32 %v432_v53 }
 0x2a6   : >> { %v731_v54 = vpop.eup %730 }
 0x2a7   : >> { %v434_v55 = vsel %vm300_vm0, %v731_v54, 0.0  ;;  %v440_v56 = vmul.f32 %v731_v54, %v1075_v14 }
 0x2a8   : >> { %v733_v57 = vpop.eup %732  ;;  %435 = vadd.xlane.f32.xlu0 %v434_v55 }
 0x2a9   : >> { %v442_v58 = vsel %vm300_vm0, %v440_v56, 0.0  ;;  %v448_v59 = vmul.f32 %v440_v56, %v1075_v14  ;;  %v437_v60 = vsel %vm300_vm0, %v733_v57, 0.0  ;;  %v441_v61 = vmul.f32 %v733_v57, %v1077_v15 }
 0x2aa   : >> { %443 = vadd.xlane.f32.xlu1 %v442_v58  ;;  %v486_v14 = vlaneseq }
 0x2ab   : >> { %v450_v62 = vsel %vm300_vm0, %v448_v59, 0.0  ;;  %v445_v63 = vsel %vm300_vm0, %v441_v61, 0.0  ;;  %v449_v12 = vmul.f32 %v441_v61, %v1077_v15 }
 0x2ac   : >> { %438 = vadd.xlane.f32.xlu0 %v437_v60  ;;  %v487_v19 = vand.u32 127, %v486_v14  ;;  %v489_v22 = vshrl.u32 %v486_v14, 7 }
 0x2ad   : >> { %v453_v13 = vsel %vm300_vm0, %v449_v12, 0.0 }
 0x2ae   : >> { %451 = vadd.xlane.f32.xlu1 %v450_v62  ;;  %v492_v20 = vadd.s32 4294967288, %v487_v19  ;;  %v490_v29 = vsub.s32 %v487_v19, %v489_v22 }
 0x2b0   : >> { %446 = vadd.xlane.f32.xlu0 %v445_v63  ;;  %v495_v27 = vsub.s32 %v492_v20, %v489_v22 }
 0x2b4   : >> { %454 = vadd.xlane.f32.xlu0 %v453_v13 }
 0x335   : >> { %v436_v16 = vpop.xlane.xlu0 %435 }
 0x336   : >> { %734 = vrcp.f32 %v436_v16 }
 0x337   : >> { %v444_v18 = vpop.xlane.xlu1 %443 }
 0x339   : >> { %v439_v17 = vpop.xlane.xlu0 %438 }
 0x33a   : >> { %736 = vrcp.f32 %v439_v17 }
 0x33b   : >> { %v452_v25 = vpop.xlane.xlu1 %451 }
 0x33d   : >> { %v447_v24 = vpop.xlane.xlu0 %446 }
 0x340   : >> { %v735_v21 = vpop.eup %734 }
 0x341   : >> { %v460_v23 = vmul.f32 %v735_v21, %v444_v18  ;;  %v462_v26 = vmul.f32 %v735_v21, %v452_v25  ;;  %v455_v35 = vpop.xlane.xlu0 %454 }
 0x343   : >> { %v464_v15 = vmul.f32 %v460_v23, %v460_v23  ;;  %v491_v36 = vrot.slane %v460_v23, %v490_v29 }
 0x344   : >> { %v737_v28 = vpop.eup %736 }
 0x345   : >> { %v466_v30 = vsub.f32 %v462_v26, %v464_v15  ;;  %v461_v31 = vmul.f32 %v737_v28, %v447_v24  ;;  %v463_v37 = vmul.f32 %v737_v28, %v455_v35 }
 0x347   : >> { %v468_v32 = vmax.f32 %v466_v30, 1e-09  ;;  %v465_v33 = vmul.f32 %v461_v31, %v461_v31  ;;  %v496_v34 = vrot.slane %v461_v31, %v495_v27 }
 0x349   : >> { %738 = vrsqrt.f32 %v468_v32  ;;  %v498_v38 = vsel %vm497_vm3, %v496_v34, %v491_v36  ;;  %v467_v39 = vsub.f32 %v463_v37, %v465_v33  ;;  %vm472_vm5 = vcmp.eq.f32.partialorder %v468_v32, inf }
 0x34a   : >> { %503 = vst.msk [vmem:[%s501_s16] sm:$0x1] %vm502_vm4, %v498_v38  ;;  %v475_v45 = vand.u32 2147483648, %v468_v32  ;;  %vm474_vm6 = vcmp.eq.f32.partialorder %v468_v32, 0.0 }
 0x34b   : >> { %v469_v40 = vmax.f32 %v467_v39, 1e-09 }
 0x34d   : >> { %740 = vrsqrt.f32 %v469_v40  ;;  %vm479_vm7 = vcmp.eq.f32.partialorder %v469_v40, inf  ;;  %v482_v48 = vand.u32 2147483648, %v469_v40  ;;  %vm481_vm8 = vcmp.eq.f32.partialorder %v469_v40, 0.0 }
 0x353   : >> { %v739_v41 = vpop.eup %738 }
 0x354   : >> { %v471_v42 = vmul.f32 %v739_v41, %v468_v32 }
 0x356   : >> { %v473_v43 = vsel %vm472_vm5, %v468_v32, %v471_v42 }
 0x357   : >> { %v741_v44 = vpop.eup %740  ;;  %v476_v47 = vsel %vm474_vm6, %v475_v45, %v473_v43 }
 0x358   : >> { %v478_v46 = vmul.f32 %v741_v44, %v469_v40  ;;  %v509_v51 = vrot.slane %v476_v47, %v490_v29 }
 0x359   : > { %263 = sbr.rel (!%p261_p6) target bundleno = 61 (0x3d), region = 94 }
 0x35a   : >> { %v480_v49 = vsel %vm479_vm7, %v469_v40, %v478_v46 }
 0x35b   : >> { %v483_v50 = vsel %vm481_vm8, %v482_v48, %v480_v49 }
 0x35c   : >> { %v513_v52 = vrot.slane %v483_v50, %v495_v27 }
 0x35e   : >> { %v514_v53 = vsel %vm497_vm3, %v513_v52, %v509_v51 }
 0x35f   : >> { %516 = vst.msk [vmem:[%s501_s16 + $0x1] sm:$0x1] %vm502_vm4, %v514_v53 }
 0x360   : > { %785 = shalt.err (!%p782_p3)
}
 0x361   : > { %s786_s25 = scalar_lea.hbm %s1115_s10, 64  ;;  %s790_s12 = scalar_lea.hbm %s1166_s5, 256 }
 0x362   : > { %p787_p4 = scmp.ne.s32.totalorder %s1115_s10, %s786_s25  ;;  %p791_p2 = scmp.lt.u32.totalorder %s1115_s10, %s1166_s5 }
 0x363   : > { %p792_p7 = scmp.lt.u32.totalorder %s790_s12, %s786_s25  ;;  %p794_p10 = scmp.lt.u32.totalorder %s786_s25, %s1115_s10 }
 0x364   : > { %p788_p5 = pnand %p787_p4, %p1173_p11 }
 0x365   : > { %p793_p6 = por %p792_p7, %p791_p2 }
 0x366   : > { %p789_p0 = pneg %p788_p5 }
 0x367   : > { %p795_p12 = por %p794_p10, %p793_p6 }
 0x369   : > { %p796_p8 = pnand %p795_p12, %p789_p0 }
 0x36b   : > { %799 = shalt.err (!%p796_p8)
}
 0x36c   : > { %s855_s8 = smov 32   ;;  %s856_s7 = smov 2  }
 0x36d   : > { %661 = dma.vmem_to_hbm [thread:$0]  (%p1173_p11), %s1118_s29, 64, %s1115_s10, %s518_s11, %s855_s8, %s855_s8, %s856_s7  }
 0x36e PF: > { %p672_p9 = scmp.ge.s32.totalorder %s842_s21, 2  ;;  %s546_s9 = sand.u32 1, %s830_s18  }
 0x36f   : > { %p1174_p13 = scmp.ne.s32.totalorder %s1171_s6, 0  ;;  %s547_s13 = scalar_lea.sflag [#allocation4], %s546_s9 }
 0x371   : > { %p668_p1 = pnand %p672_p9, %p1174_p13 }
 0x373   : > { %825 = dma.done.wait (!%p668_p1), %s547_s13, 64  }
 0x374   : > { %827 = vsyncadd (!%p668_p1), %s547_s13, 4294967232  ;;  %p18_p3 = scmp.ge.s32.totalorder %s912_s24, 6   ;;  %s1175_s18 = smov %s834_s19 }
 0x375   : > { %s1176_s19 = smov %s838_s20  ;;  %s1177_s20 = smov %s924_s27 }
 0x376   : > { %s1178_s21 = smov %s912_s24  ;;  %20 = sbr.rel (!%p18_p3) target bundleno = 5 (0x5), region = 105 }
 0x37d   :  { %552 = vsyncpa [#allocation3], 1 }
 0x37e   :  { %554 = vsyncpa [#allocation3 + $0x1], 1 }
 0x37f   :  { %555 = vsyncpa [#allocation4], 1 }
 0x380   :  { %557 = vsyncpa [#allocation4 + $0x1], 1 }

</bundles_post_ra>
